<compile_context>
chip_gen: v7x
topology: tpu7x:2x2x1
jax: 0.10.0
libtpu: 0.0.40
codegen_flags: <defaults>
</compile_context>

<pallas_src>
import math

import jax
import jax.numpy as jnp
import numpy as np
from jax import lax
from jax.experimental import pallas as pl
from jax.experimental.pallas import tpu as pltpu


# ----------------------------------------------------------------------------
# helpers
# ----------------------------------------------------------------------------
def _round_up(x, m):
    return (x + m - 1) // m * m


def _largest_divisor_at_most(n, cap):
    cap = int(max(1, min(n, cap)))
    for d in range(cap, 0, -1):
        if n % d == 0:
            return d
    return 1


def _compiler_params(vmem_need_bytes):
    # explicit VMEM budget (generation-safe: capped well under v7x's 64 MiB)
    limit = int(min(max(vmem_need_bytes + (8 << 20), 16 << 20), 64 << 20))
    return pltpu.CompilerParams(
        dimension_semantics=("parallel", "parallel"),
        vmem_limit_bytes=limit,
    )


# ----------------------------------------------------------------------------
# with_conv=True : pad (0,1,0,1) + 3x3 stride-2 conv as quad-packed matmuls
# ----------------------------------------------------------------------------
def _conv_kernel(body_ref, halo_ref, w_ref, b_ref, o_ref):
    # body_ref: (1, TH, Wp, 4*Cin)  packed rows [t*TH, t*TH+TH)
    # halo_ref: (1, 1,  Wp, 4*Cin)  packed row  t*TH+TH  (the +1 halo row)
    # w_ref:    (4, 4*Cin, Cp)      quad-packed weights (Cout padded to Cp)
    # b_ref:    (1, Cp)             bias (f32)
    # o_ref:    (1, TH, Wo, Cp)
    _, th, wp, k4 = body_ref.shape
    _, _, wo, cp = o_ref.shape
    m = th * wp
    top = m - wp                      # rows whose "next packed row" is in the body
    f32 = jnp.float32

    xb = body_ref[0].reshape(m, k4)   # free relayout: wp % 8 == 0
    xh = halo_ref[0, 0]               # (wp, k4)

    # Single column(+1)-shifted copy, reused by both qx=1 quads.
    xb1 = jnp.concatenate([xb[1:], xh[:1]], axis=0)   # (m, k4)
    xh1 = jnp.concatenate([xh[1:], xh[:1]], axis=0)   # (wp, k4); last row unused

    # qy = 0 quads (all m rows) + bias.
    acc = jnp.dot(xb, w_ref[0], preferred_element_type=f32)
    acc = acc + jnp.dot(xb1, w_ref[1], preferred_element_type=f32)
    acc = acc + b_ref[...]

    # qy = 1 quads: shift down by one packed row (= wp flattened rows, aligned).
    bot = jnp.dot(xh, w_ref[2], preferred_element_type=f32)
    bot = bot + jnp.dot(xh1, w_ref[3], preferred_element_type=f32)
    if top > 0:
        mid = jnp.dot(xb[wp:], w_ref[2], preferred_element_type=f32)
        mid = mid + jnp.dot(xb1[wp:], w_ref[3], preferred_element_type=f32)
        out = acc + jnp.concatenate([mid, bot], axis=0)
    else:
        out = acc + bot

    out = out.reshape(th, wp, cp)[:, :wo, :]          # drop the padded columns
    o_ref[...] = out[None].astype(o_ref.dtype)


def pack_downsample_conv_params(w_oihw, bias, cout_padded,
                                param_dtype=jnp.float32):
    """Quad-pack 3x3/stride-2 conv params (pure jnp => jit/grad safe).

    w2[2*qy+qx, (dy*2+dx)*Cin + ci, co] = w[co, ci, 2*qy+dy, 2*qx+dx]
    (taps that fall outside the 3x3 kernel are zero). Can be precomputed once
    at parameter-init time.
    """
    cout, cin, kh, kw = w_oihw.shape
    assert kh == 3 and kw == 3
    wk = jnp.asarray(w_oihw, jnp.float32)
    wk = jnp.pad(wk, ((0, 0), (0, 0), (0, 1), (0, 1)))        # 3x3 -> 4x4 (zeros)
    wk = wk.reshape(cout, cin, 2, 2, 2, 2)                    # (co,ci,qy,dy,qx,dx)
    wk = wk.transpose(2, 4, 3, 5, 1, 0)                       # (qy,qx,dy,dx,ci,co)
    w2 = wk.reshape(4, 4 * cin, cout)
    w2 = jnp.pad(w2, ((0, 0), (0, 0), (0, cout_padded - cout)))
    b2 = jnp.pad(jnp.asarray(bias, jnp.float32),
                 (0, cout_padded - cout)).reshape(1, cout_padded)
    return w2.astype(param_dtype), b2


def downsample_conv(x_nchw, w_oihw, bias, *, compute_dtype=None,
                    tile_target_bytes=4 << 20):
    """with_conv=True path. NCHW in / NCHW out."""
    n, cin, h, w = x_nchw.shape
    assert h % 2 == 0 and w % 2 == 0
    cout = w_oihw.shape[0]
    ho, wo = h // 2, w // 2
    k4 = 4 * cin
    cp = _round_up(cout, 128)         # lane-dense output stores
    wp = _round_up(wo + 1, 8)         # packed width (incl. +1 col), sublane aligned

    if compute_dtype is None:
        compute_dtype = x_nchw.dtype
    compute_dtype = jnp.dtype(compute_dtype)

    w2, b2 = pack_downsample_conv_params(w_oihw, bias, cp, compute_dtype)

    # NHWC + bottom/right zero pad + 2x2 space-to-depth (XLA fuses into one
    # repack pass) -> (N, Ho+1, Wp, 4*Cin). Stride-2 conv becomes plain matmuls.
    x = jnp.transpose(x_nchw, (0, 2, 3, 1))
    x = jnp.pad(x, ((0, 0), (0, 2), (0, 2 * wp - w), (0, 0)))
    xs = x.reshape(n, ho + 1, 2, wp, 2, cin)
    xs = xs.transpose(0, 1, 3, 2, 4, 5).reshape(n, ho + 1, wp, k4)
    xs = xs.astype(compute_dtype)

    isz = xs.dtype.itemsize
    osz = jnp.dtype(x_nchw.dtype).itemsize
    row_bytes = wp * k4 * isz
    th = _largest_divisor_at_most(ho, max(1, tile_target_bytes // row_bytes))

    body_bytes = th * row_bytes
    out_bytes = th * wo * cp * osz
    w_bytes = 4 * k4 * cp * isz
    vmem_need = (2 * (body_bytes + row_bytes + out_bytes) + 2 * w_bytes
                 + 4 * th * wp * max(k4, cp) * 4)   # in-kernel f32 temporaries

    cost = pl.CostEstimate(
        flops=2 * n * ho * wo * cout * cin * 9,
        transcendentals=0,
        bytes_accessed=xs.size * isz + n * ho * wo * cp * osz + 4 * k4 * cp * isz)

    out = pl.pallas_call(
        _conv_kernel,
        out_shape=jax.ShapeDtypeStruct((n, ho, wo, cp), x_nchw.dtype),
        grid=(n, ho // th),
        in_specs=[
            pl.BlockSpec((1, th, wp, k4), lambda i, t: (i, t, 0, 0)),
            pl.BlockSpec((1, 1, wp, k4), lambda i, t: (i, (t + 1) * th, 0, 0)),
            pl.BlockSpec((4, k4, cp), lambda i, t: (0, 0, 0)),
            pl.BlockSpec((1, cp), lambda i, t: (0, 0)),
        ],
        out_specs=pl.BlockSpec((1, th, wo, cp), lambda i, t: (i, t, 0, 0)),
        compiler_params=_compiler_params(vmem_need),
        cost_estimate=cost,
    )(xs, xs, w2, b2)

    return jnp.transpose(out[..., :cout], (0, 3, 1, 2))


# ----------------------------------------------------------------------------
# with_conv=False : 2x2 average pool, stride 2
# ----------------------------------------------------------------------------
def _pool_kernel(x_ref, o_ref):
    # x_ref: (1, 2*TH, Wo, 2*C)   o_ref: (1, TH, Wo, C)
    _, th2, wo, c2 = x_ref.shape
    th, c = th2 // 2, c2 // 2
    x = x_ref[0].astype(jnp.float32).reshape(th, 2, wo, c2)
    rows = x[:, 0] + x[:, 1]                 # sum over the two H rows
    s = rows[..., :c] + rows[..., c:]        # sum over the two W columns
    o_ref[...] = (0.25 * s)[None].astype(o_ref.dtype)


def downsample_pool(x_nchw, *, tile_target_bytes=4 << 20):
    """with_conv=False path. NCHW in / NCHW out."""
    n, c, h, w = x_nchw.shape
    assert h % 2 == 0 and w % 2 == 0
    ho, wo = h // 2, w // 2
    # NHWC + a *free* reshape folding W-pairs into channels; the reduction
    # itself happens inside the kernel.
    x = jnp.transpose(x_nchw, (0, 2, 3, 1)).reshape(n, h, wo, 2 * c)

    isz = x.dtype.itemsize
    row_bytes = 2 * wo * 2 * c * isz         # input bytes per output row
    th = _largest_divisor_at_most(ho, max(1, tile_target_bytes // row_bytes))

    vmem_need = (2 * (2 * th * wo * 2 * c * isz + th * wo * c * isz)
                 + 2 * th * wo * 2 * c * 4)
    cost = pl.CostEstimate(flops=4 * n * ho * wo * c, transcendentals=0,
                           bytes_accessed=x.size * isz + n * ho * wo * c * isz)

    out = pl.pallas_call(
        _pool_kernel,
        out_shape=jax.ShapeDtypeStruct((n, ho, wo, c), x_nchw.dtype),
        grid=(n, ho // th),
        in_specs=[pl.BlockSpec((1, 2 * th, wo, 2 * c),
                               lambda i, t: (i, t, 0, 0))],
        out_specs=pl.BlockSpec((1, th, wo, c), lambda i, t: (i, t, 0, 0)),
        compiler_params=_compiler_params(vmem_need),
        cost_estimate=cost,
    )(x)
    return jnp.transpose(out, (0, 3, 1, 2))


# ----------------------------------------------------------------------------
# self-test
# ----------------------------------------------------------------------------
if __name__ == "__main__":
    key = jax.random.PRNGKey(0)
    kx, kw, kb = jax.random.split(key, 3)
    N, C, H, W = 2, 4, 16, 16
    x = jax.random.normal(kx, (N, C, H, W), jnp.float32)

    # Deterministic Conv2d(C, C, 3) params (PyTorch-style uniform bound).
    fan_in = C * 3 * 3
    bound = 1.0 / math.sqrt(fan_in)
    w = jax.random.uniform(kw, (C, C, 3, 3), jnp.float32, -bound, bound)
    b = jax.random.uniform(kb, (C,), jnp.float32, -bound, bound)

    # Reference for with_conv=True: F.pad((0,1,0,1)) + Conv2d(k=3, s=2, p=0).
    x_pad = jnp.pad(x, ((0, 0), (0, 0), (0, 1), (0, 1)))
    ref_conv = lax.conv_general_dilated(
        x_pad, w, window_strides=(2, 2), padding="VALID",
        dimension_numbers=("NCHW", "OIHW", "NCHW")) + b[None, :, None, None]

    # f32 path
    y_conv = jax.block_until_ready(downsample_conv(x, w, b))
    np.testing.assert_allclose(np.asarray(y_conv), np.asarray(ref_conv),
                               rtol=1e-5, atol=1e-5)

    # bf16 MXU-operand path (v6e/v7x fast path; f32 accumulation)
    y_bf16 = jax.block_until_ready(
        downsample_conv(x, w, b, compute_dtype=jnp.bfloat16))
    np.testing.assert_allclose(np.asarray(y_bf16), np.asarray(ref_conv),
                               rtol=1e-1, atol=1e-1)

    # with_conv=False path: avg_pool2d(2, 2)
    y_pool = jax.block_until_ready(downsample_pool(x))
    ref_pool = x.reshape(N, C, H // 2, 2, W // 2, 2).mean(axis=(3, 5))
    np.testing.assert_allclose(np.asarray(y_pool), np.asarray(ref_pool),
                               rtol=1e-5, atol=1e-5)

    print("KERNEL_OK")
</pallas_src>

<mosaic_0001>
module attributes {stable_mosaic.version = 11 : i64} {
  func.func @_conv_kernel(%arg0: i32, %arg1: i32, %arg2: memref<1x8x16x16xf32, #tpu.memory_space<vmem>>, %arg3: memref<1x1x16x16xf32, #tpu.memory_space<vmem>>, %arg4: memref<4x16x128xf32, #tpu.memory_space<vmem>>, %arg5: memref<1x128xf32, #tpu.memory_space<vmem>>, %arg6: memref<1x8x8x128xf32, #tpu.memory_space<vmem>>) attributes {dimension_semantics = [#tpu.dimension_semantics<parallel>, #tpu.dimension_semantics<parallel>], iteration_bounds = array<i64: 2, 1>, scalar_prefetch = 0 : i64, scratch_operands = 0 : i64, tpu.core_type = #tpu.core_type<tc>, window_params = [{transform_indices = @transform_0, window_bounds = array<i64: 1, 8, 16, 16>}, {transform_indices = @transform_1, window_bounds = array<i64: 1, 1, 16, 16>}, {pipeline_mode = #tpu.pipeline_mode<synchronous>, transform_indices = @transform_2, window_bounds = array<i64: 4, 16, 128>}, {pipeline_mode = #tpu.pipeline_mode<synchronous>, transform_indices = @transform_3, window_bounds = array<i64: 1, 128>}, {transform_indices = @transform_4, window_bounds = array<i64: 1, 8, 8, 128>}]} {
    %c0 = arith.constant 0 : index
    %c0_0 = arith.constant 0 : index
    %c0_1 = arith.constant 0 : index
    %c0_2 = arith.constant 0 : index
    %0 = vector.load %arg2[%c0, %c0_0, %c0_1, %c0_2] : memref<1x8x16x16xf32, #tpu.memory_space<vmem>>, vector<1x8x16x16xf32>
    %1 = vector.shape_cast %0 : vector<1x8x16x16xf32> to vector<8x16x16xf32>
    %2 = vector.shape_cast %1 : vector<8x16x16xf32> to vector<128x16xf32>
    %c0_3 = arith.constant 0 : index
    %c0_4 = arith.constant 0 : index
    %c0_5 = arith.constant 0 : index
    %c0_6 = arith.constant 0 : index
    %3 = vector.load %arg3[%c0_3, %c0_4, %c0_5, %c0_6] : memref<1x1x16x16xf32, #tpu.memory_space<vmem>>, vector<1x1x16x16xf32>
    %4 = vector.shape_cast %3 : vector<1x1x16x16xf32> to vector<16x16xf32>
    %5 = vector.extract_strided_slice %2 {offsets = [1, 0], sizes = [127, 16], strides = [1, 1]} : vector<128x16xf32> to vector<127x16xf32>
    %6 = vector.extract_strided_slice %4 {offsets = [0, 0], sizes = [1, 16], strides = [1, 1]} : vector<16x16xf32> to vector<1x16xf32>
    %7 = tpu.concatenate %5, %6 in 0 : vector<127x16xf32>, vector<1x16xf32> -> vector<128x16xf32>
    %8 = vector.extract_strided_slice %4 {offsets = [1, 0], sizes = [15, 16], strides = [1, 1]} : vector<16x16xf32> to vector<15x16xf32>
    %9 = vector.extract_strided_slice %4 {offsets = [0, 0], sizes = [1, 16], strides = [1, 1]} : vector<16x16xf32> to vector<1x16xf32>
    %10 = tpu.concatenate %8, %9 in 0 : vector<15x16xf32>, vector<1x16xf32> -> vector<16x16xf32>
    %c0_7 = arith.constant 0 : index
    %c0_8 = arith.constant 0 : index
    %c0_9 = arith.constant 0 : index
    %11 = vector.load %arg4[%c0_7, %c0_8, %c0_9] : memref<4x16x128xf32, #tpu.memory_space<vmem>>, vector<1x16x128xf32>
    %12 = vector.shape_cast %11 : vector<1x16x128xf32> to vector<16x128xf32>
    %cst = arith.constant dense<0.000000e+00> : vector<128x128xf32>
    %13 = tpu.matmul %2, %12, %cst {dimension_numbers = #tpu.dot_dimension_numbers<[1], [0], [0], [1], [0, 0, 1, 1], [], []>} : vector<128x16xf32>, vector<16x128xf32>, vector<128x128xf32> -> vector<128x128xf32>
    %c1 = arith.constant 1 : index
    %c0_10 = arith.constant 0 : index
    %c0_11 = arith.constant 0 : index
    %14 = vector.load %arg4[%c1, %c0_10, %c0_11] : memref<4x16x128xf32, #tpu.memory_space<vmem>>, vector<1x16x128xf32>
    %15 = vector.shape_cast %14 : vector<1x16x128xf32> to vector<16x128xf32>
    %cst_12 = arith.constant dense<0.000000e+00> : vector<128x128xf32>
    %16 = tpu.matmul %7, %15, %cst_12 {dimension_numbers = #tpu.dot_dimension_numbers<[1], [0], [0], [1], [0, 0, 1, 1], [], []>} : vector<128x16xf32>, vector<16x128xf32>, vector<128x128xf32> -> vector<128x128xf32>
    %17 = arith.addf %13, %16 : vector<128x128xf32>
    %c0_13 = arith.constant 0 : index
    %c0_14 = arith.constant 0 : index
    %18 = vector.load %arg5[%c0_13, %c0_14] : memref<1x128xf32, #tpu.memory_space<vmem>>, vector<1x128xf32>
    %19 = vector.broadcast %18 : vector<1x128xf32> to vector<128x128xf32>
    %20 = arith.addf %17, %19 : vector<128x128xf32>
    %c2 = arith.constant 2 : index
    %c0_15 = arith.constant 0 : index
    %c0_16 = arith.constant 0 : index
    %21 = vector.load %arg4[%c2, %c0_15, %c0_16] : memref<4x16x128xf32, #tpu.memory_space<vmem>>, vector<1x16x128xf32>
    %22 = vector.shape_cast %21 : vector<1x16x128xf32> to vector<16x128xf32>
    %cst_17 = arith.constant dense<0.000000e+00> : vector<16x128xf32>
    %23 = tpu.matmul %4, %22, %cst_17 {dimension_numbers = #tpu.dot_dimension_numbers<[1], [0], [0], [1], [0, 0, 1, 1], [], []>} : vector<16x16xf32>, vector<16x128xf32>, vector<16x128xf32> -> vector<16x128xf32>
    %c3 = arith.constant 3 : index
    %c0_18 = arith.constant 0 : index
    %c0_19 = arith.constant 0 : index
    %24 = vector.load %arg4[%c3, %c0_18, %c0_19] : memref<4x16x128xf32, #tpu.memory_space<vmem>>, vector<1x16x128xf32>
    %25 = vector.shape_cast %24 : vector<1x16x128xf32> to vector<16x128xf32>
    %cst_20 = arith.constant dense<0.000000e+00> : vector<16x128xf32>
    %26 = tpu.matmul %10, %25, %cst_20 {dimension_numbers = #tpu.dot_dimension_numbers<[1], [0], [0], [1], [0, 0, 1, 1], [], []>} : vector<16x16xf32>, vector<16x128xf32>, vector<16x128xf32> -> vector<16x128xf32>
    %27 = arith.addf %23, %26 : vector<16x128xf32>
    %28 = vector.extract_strided_slice %2 {offsets = [16, 0], sizes = [112, 16], strides = [1, 1]} : vector<128x16xf32> to vector<112x16xf32>
    %c2_21 = arith.constant 2 : index
    %c0_22 = arith.constant 0 : index
    %c0_23 = arith.constant 0 : index
    %29 = vector.load %arg4[%c2_21, %c0_22, %c0_23] : memref<4x16x128xf32, #tpu.memory_space<vmem>>, vector<1x16x128xf32>
    %30 = vector.shape_cast %29 : vector<1x16x128xf32> to vector<16x128xf32>
    %cst_24 = arith.constant dense<0.000000e+00> : vector<112x128xf32>
    %31 = tpu.matmul %28, %30, %cst_24 {dimension_numbers = #tpu.dot_dimension_numbers<[1], [0], [0], [1], [0, 0, 1, 1], [], []>} : vector<112x16xf32>, vector<16x128xf32>, vector<112x128xf32> -> vector<112x128xf32>
    %32 = vector.extract_strided_slice %7 {offsets = [16, 0], sizes = [112, 16], strides = [1, 1]} : vector<128x16xf32> to vector<112x16xf32>
    %c3_25 = arith.constant 3 : index
    %c0_26 = arith.constant 0 : index
    %c0_27 = arith.constant 0 : index
    %33 = vector.load %arg4[%c3_25, %c0_26, %c0_27] : memref<4x16x128xf32, #tpu.memory_space<vmem>>, vector<1x16x128xf32>
    %34 = vector.shape_cast %33 : vector<1x16x128xf32> to vector<16x128xf32>
    %cst_28 = arith.constant dense<0.000000e+00> : vector<112x128xf32>
    %35 = tpu.matmul %32, %34, %cst_28 {dimension_numbers = #tpu.dot_dimension_numbers<[1], [0], [0], [1], [0, 0, 1, 1], [], []>} : vector<112x16xf32>, vector<16x128xf32>, vector<112x128xf32> -> vector<112x128xf32>
    %36 = arith.addf %31, %35 : vector<112x128xf32>
    %37 = tpu.concatenate %36, %27 in 0 : vector<112x128xf32>, vector<16x128xf32> -> vector<128x128xf32>
    %38 = arith.addf %20, %37 : vector<128x128xf32>
    %39 = vector.shape_cast %38 : vector<128x128xf32> to vector<8x16x128xf32>
    %40 = vector.extract_strided_slice %39 {offsets = [0, 0, 0], sizes = [8, 8, 128], strides = [1, 1, 1]} : vector<8x16x128xf32> to vector<8x8x128xf32>
    %41 = vector.shape_cast %40 : vector<8x8x128xf32> to vector<1x8x8x128xf32>
    %c0_29 = arith.constant 0 : index
    %c0_30 = arith.constant 0 : index
    %c0_31 = arith.constant 0 : index
    %c0_32 = arith.constant 0 : index
    %42 = vector.load %arg6[%c0_29, %c0_30, %c0_31, %c0_32] : memref<1x8x8x128xf32, #tpu.memory_space<vmem>>, vector<1x8x8x128xf32>
    tpu.vector_store %arg6[%c0_29, %c0_30, %c0_31, %c0_32], %41 {strides = array<i32>} : memref<1x8x8x128xf32, #tpu.memory_space<vmem>>, vector<1x8x8x128xf32>,
    return
  }
  func.func @transform_0(%arg0: i32, %arg1: i32) -> (i32, i32, i32, i32) {
    %c0_i32 = arith.constant 0 : i32
    %c0_i32_0 = arith.constant 0 : i32
    %c0_i32_1 = arith.constant 0 : i32
    return %arg0, %arg1, %c0_i32, %c0_i32_0 : i32, i32, i32, i32
  }
  func.func @transform_1(%arg0: i32, %arg1: i32) -> (i32, i32, i32, i32) {
    %c1_i32 = arith.constant 1 : i32
    %0 = arith.addi %arg1, %c1_i32 : i32
    %c8_i32 = arith.constant 8 : i32
    %1 = arith.muli %0, %c8_i32 : i32
    %c0_i32 = arith.constant 0 : i32
    %c0_i32_0 = arith.constant 0 : i32
    %c0_i32_1 = arith.constant 0 : i32
    return %arg0, %1, %c0_i32, %c0_i32_0 : i32, i32, i32, i32
  }
  func.func @transform_2(%arg0: i32, %arg1: i32) -> (i32, i32, i32) {
    %c0_i32 = arith.constant 0 : i32
    %c0_i32_0 = arith.constant 0 : i32
    %c0_i32_1 = arith.constant 0 : i32
    %c0_i32_2 = arith.constant 0 : i32
    return %c0_i32, %c0_i32_0, %c0_i32_1 : i32, i32, i32
  }
  func.func @transform_3(%arg0: i32, %arg1: i32) -> (i32, i32) {
    %c0_i32 = arith.constant 0 : i32
    %c0_i32_0 = arith.constant 0 : i32
    %c0_i32_1 = arith.constant 0 : i32
    return %c0_i32, %c0_i32_0 : i32, i32
  }
  func.func @transform_4(%arg0: i32, %arg1: i32) -> (i32, i32, i32, i32) {
    %c0_i32 = arith.constant 0 : i32
    %c0_i32_0 = arith.constant 0 : i32
    %c0_i32_1 = arith.constant 0 : i32
    return %arg0, %arg1, %c0_i32, %c0_i32_0 : i32, i32, i32, i32
  }
}

</mosaic_0001>

<bundles_post_ra>
// kernel: tpu_custom_call.1
= control target key start
LH: loop header
LB: loop body
LE: loop exit
PB: predicated region body
PF: predicated region fallthrough
CT: control target
= control target key end

     0   :  { %s2437_s0 = inlined_call_operand.hbm [shape: f32[2,9,16,16], index: 0, kind: input, shape index: {}]   ;;  %s2438_s1 = inlined_call_operand.hbm [shape: f32[2,9,16,16], index: 1, kind: input, shape index: {}]   ;;  %s2439_s2 = inlined_call_operand.hbm [shape: f32[4,16,128], index: 2, kind: input, shape index: {}]   ;;  %s2440_s3 = inlined_call_operand.vmem [shape: f32[1,128], index: 3, kind: input, shape index: {}]   ;;  %s2441_s4 = inlined_call_operand.hbm [shape: f32[2,8,8,128], index: 4, kind: output, shape index: {}]  }
   0x1   :  { %2450 = sst [smem:[#allocation16_spill]] %s2437_s0 }
   0x2   :  { %2451 = sst [smem:[#allocation17_spill]] %s2439_s2 }
   0x3   :  { %9 = vsyncpa [#allocation3], 0 }
   0x4   :  { %11 = vsyncpa [#allocation3 + $0x1], 0 }
   0x5   :  { %12 = vsyncpa [#allocation6], 0 }
   0x6   :  { %14 = vsyncpa [#allocation6 + $0x1], 0 }
   0x7   :  { %15 = vsyncpa [#allocation4], 0 }
   0x8   :  { %17 = vsyncpa [#allocation4 + $0x1], 0  ;;  %s1976_s15 = smov 0   ;;  %s1978_s16 = smov 0  }
   0x9   :  { %s1980_s17 = smov 0   ;;  %s1982_s18 = smov 0  }
   0xa   :  { %s1984_s19 = smov 0   ;;  %s1986_s20 = smov 0  }
   0xb LB: > { %2452 = sst [smem:[#allocation13_spill]] %s1929_s17  ;;  %s2007_s21 = sadd.s32 4294967295, %s1941_s20   ;;  %s1941_s20 = sphi %s1986_s20, %s23_s20   ;;  %s1937_s19 = sphi %s1984_s19, %s2479_s19   ;;  %s1933_s18 = sphi %s1982_s18, %s2478_s18   ;;  %s1929_s17 = sphi %s1980_s17, %s2474_s17   ;;  %s1925_s16 = sphi %s1978_s16, %s2477_s16   ;;  %s1921_s15 = sphi %s1976_s15, %s2476_s15  }
   0xc   : > { %s1327_s22 = sadd.s32 4294967294, %s1941_s20   ;;  %p57_p0 = scmp.ne.s32.totalorder %s1925_s16, %s1921_s15 }
   0xd   : > { %p2442_p1 = scmp.eq.s32.totalorder %s2007_s21, 0  ;;  %p163_p3 = scmp.eq.s32.totalorder %s1327_s22, 1 }
   0xe   : > { %p1328_p5 = scmp.ge.s32.totalorder %s1941_s20, 1  ;;  %p170_p7 = scmp.lt.s32.totalorder %s1941_s20, 3 }
   0xf   : > { %p2016_p4 = por %p2442_p1, %p57_p0  ;;  %p2021_p6 = por %p163_p3, %p57_p0 }
  0x10   : > { %p2026_p8 = pnand %p1328_p5, %p170_p7  ;;  %s1943_s26 = smov [#allocation7]  }
  0x11   : > { %s2453_s23 = scalar_select %p2016_p4, 1, 0 }
  0x12   : > { %s2454_s24 = scalar_select %p2021_p6, 1, 0 }
  0x13   : > { %s2455_s25 = scalar_select %p2026_p8, 1, 0 }
  0x14   : > { %s182_s27 = sshll.u32 %s1943_s26, 4  ;;  %p1690_p9 = pneg %p2026_p8  ;;  %s183_s27 = int_to_ptr.vmem [resolvable:$true] %s182_s27 }
  0x15   : > { %s35_s29 = sadd.s32 1, %s1937_s19  ;;  %s2457_s2 = sld [smem:[#allocation17_spill]] }
  0x16   : > { %p2035_p11 = pnand %p1690_p9, %p2442_p1 }
  0x18   : > { %p1764_p13 = pneg %p2035_p11 }
  0x1b   : > { %s1762_s6 = scalar_lea.hbm %s2457_s2, 1024 }
  0x1c   : > { %p1763_p12 = scmp.ne.s32.totalorder %s2457_s2, %s1762_s6  ;;  %p1769_p5 = scmp.lt.u32.totalorder %s1762_s6, %s2457_s2 }
  0x1e   : > { %p1765_p0 = pnand %p1764_p13, %p1763_p12 }
  0x20   : > { %p1766_p3 = pneg %p1765_p0 }
  0x22   : > { %p1771_p7 = pnand %p1769_p5, %p1766_p3 }
  0x24   : > { %1774 = shalt.err (!%p1771_p7)
}
  0x25   : > { %s1775_s11 = scalar_lea.vmem %s183_s27, 1024  ;;  %p1783_p2 = scmp.lt.s32.totalorder %s183_s27, %s183_s27 }
  0x26   : > { %p1776_p9 = scmp.ne.s32.totalorder %s183_s27, %s1775_s11  ;;  %p1784_p6 = scmp.lt.s32.totalorder %s1775_s11, %s1775_s11 }
  0x28   : > { %p1778_p10 = pnand %p1776_p9, %p1764_p13  ;;  %p1785_p4 = por %p1784_p6, %p1783_p2 }
  0x2a   : > { %p1779_p1 = pneg %p1778_p10 }
  0x2c   : > { %p1786_p8 = pnand %p1785_p4, %p1779_p1 }
  0x2e   : > { %1789 = shalt.err (!%p1786_p8)
}
  0x2f   : > { %s2446_s12 = smov 128   ;;  %s1945_s13 = smov 8  }
  0x30   : > { %1693 = dma.hbm_to_vmem [thread:$0]  (!%p2035_p11), %s2457_s2, 1024, %s183_s27, [#allocation6], %s2446_s12, %s2446_s12, %s1945_s13  }
  0x31   : > { %p37_p1 = scmp.ge.s32.totalorder %s35_s29, 2  ;;  %s44_s26 = sadd.s32 1, %s1929_s17 }
  0x32   : > { %p51_p2 = scmp.ne.s32.totalorder %s1929_s17, %s1925_s16  ;;  %p52_p4 = scmp.eq.s32.totalorder %s1941_s20, 0 }
  0x33   : > { %s2481_s29 = smov (%p37_p1, %s35_s29), 0  ;;  %p2459_p8 = scmp.eq.s32.totalorder %s2007_s21, 1 }
  0x34   : > { %2458 = sst [smem:[#allocation14_spill]] %s2481_s29  ;;  %p53_p6 = por %p52_p4, %p51_p2 }
  0x35   : > { %p2067_p10 = por %p2459_p8, %p51_p2  ;;  %s39_s30 = ssub.s32 %s1937_s19, %s2481_s29 }
  0x36   : > { %p1706_p12 = scmp.lt.s32.totalorder %s1941_s20, 2  ;;  %p42_p13 = scmp.eq.s32.totalorder %s39_s30, 0 }
  0x37   : > { %s2075_s5 = sand.u32 1, %s1929_s17   ;;  %s2445_s7 = smul.u32 2304, %s1937_s19 }
  0x38   : > { %s1331_s27 = sshll.u32 %s2075_s5, 7  ;;  %p2082_p11 = pnand %p1706_p12, %p53_p6 }
  0x39   : > { %s2079_s6 = scalar_select %p42_p13, %s1929_s17, %s44_s26  }
  0x3a   : > { %s203_s8 = scalar_lea.vmem [#allocation2], %s1331_s27  ;;  %s2463_s0 = sld [smem:[#allocation16_spill]] }
  0x3b   : > { %2461 = sst [smem:[#allocation15_spill]] %s2079_s6  ;;  %s221_s9 = sshll.u32 %s203_s8, 4  ;;  %s2093_s9 = int_to_ptr.vmem [resolvable:$true] %s221_s9 }
  0x3c   : > { %s200_s30 = scalar_lea.sflag [#allocation3], %s2075_s5  ;;  %p1792_p3 = pneg %p2082_p11 }
  0x40   : > { %s2091_s22 = scalar_lea.hbm %s2463_s0, %s2445_s7  ;;  %s1795_s14 = scalar_lea.hbm %s2463_s0, 4608 }
  0x41   : > { %s1790_s27 = scalar_lea.hbm %s2091_s22, 2048  ;;  %p1796_p9 = scmp.lt.u32.totalorder %s2091_s22, %s2463_s0 }
  0x42   : > { %p1791_p0 = scmp.ne.s32.totalorder %s2091_s22, %s1790_s27  ;;  %p1797_p1 = scmp.lt.u32.totalorder %s1795_s14, %s1790_s27 }
  0x43   : > { %p1799_p4 = scmp.lt.u32.totalorder %s1790_s27, %s2091_s22 }
  0x44   : > { %p1793_p5 = pnand %p1792_p3, %p1791_p0  ;;  %p1798_p2 = por %p1797_p1, %p1796_p9 }
  0x46   : > { %p1794_p7 = pneg %p1793_p5  ;;  %p1800_p6 = por %p1799_p4, %p1798_p2 }
  0x48   : > { %p1801_p8 = pnand %p1800_p6, %p1794_p7 }
  0x4a   : > { %1804 = shalt.err (!%p1801_p8)
}
  0x4b   : > { %s1805_s26 = scalar_lea.vmem %s2093_s9, 2048  ;;  %s1946_s8 = smov [#allocation2]  }
  0x4c   : > { %p1806_p12 = scmp.ne.s32.totalorder %s2093_s9, %s1805_s26  ;;  %s1810_s11 = sshll.u32 %s1946_s8, 4  ;;  %s1811_s11 = int_to_ptr.vmem [resolvable:$false] %s1810_s11 }
  0x4d   : > { %s1812_s12 = scalar_lea.vmem %s1811_s11, 4096  ;;  %p1813_p5 = scmp.lt.s32.totalorder %s2093_s9, %s1811_s11 }
  0x4e   : > { %p1808_p13 = pnand %p1806_p12, %p1792_p3  ;;  %p1814_p9 = scmp.lt.s32.totalorder %s1812_s12, %s1805_s26 }
  0x50   : > { %p1809_p0 = pneg %p1808_p13  ;;  %p1815_p1 = por %p1814_p9, %p1813_p5 }
  0x52   : > { %p1816_p2 = pnand %p1815_p1, %p1809_p0 }
  0x54   : > { %1819 = shalt.err (!%p1816_p2)
}
  0x55   : > { %s2464_s7 = smov 128   ;;  %s1333_s27 = sshll.u32 %s2075_s5, 4 }
  0x56   : > { %1697 = dma.hbm_to_vmem [thread:$0]  (!%p2082_p11), %s2091_s22, 2048, %s2093_s9, %s200_s30, %s2464_s7, %s2464_s7, %s1945_s13  }
  0x57   : > { %s2465_s14 = smul.u32 2304, %s1937_s19  ;;  %s235_s0 = scalar_lea.vmem [#allocation5], %s1333_s27 }
  0x58   : > { %s246_s2 = sshll.u32 %s235_s0, 4  ;;  %s2466_s29 = sand.u32 1, %s1941_s20   ;;  %s2135_s2 = int_to_ptr.vmem [resolvable:$true] %s246_s2 }
  0x59   : > { %s1248_s11 = scalar_lea.hbm %s2438_s1, %s2465_s14  ;;  %s2139_s6 = scalar_lea.sflag [#allocation6], %s2466_s29 }
  0x5a   : > { %s2133_s12 = scalar_lea.hbm %s1248_s11, 2048  ;;  %s1850_s17 = scalar_lea.hbm %s1248_s11, 2304 }
  0x5b   : > { %p1821_p7 = scmp.ne.s32.totalorder %s2133_s12, %s1850_s17  ;;  %s1825_s22 = scalar_lea.hbm %s2438_s1, 4608 }
  0x5c   : > { %p1826_p8 = scmp.lt.u32.totalorder %s2133_s12, %s2438_s1  ;;  %p1827_p12 = scmp.lt.u32.totalorder %s1825_s22, %s1850_s17 }
  0x5d   : > { %p1823_p4 = pnand %p1821_p7, %p1792_p3  ;;  %p1829_p0 = scmp.lt.u32.totalorder %s1850_s17, %s2133_s12 }
  0x5e   : > { %p1828_p13 = por %p1827_p12, %p1826_p8 }
  0x5f   : > { %p1824_p6 = pneg %p1823_p4 }
  0x60   : > { %p1830_p5 = por %p1829_p0, %p1828_p13 }
  0x62   : > { %p1831_p9 = pnand %p1830_p5, %p1824_p6 }
  0x64   : > { %1834 = shalt.err (!%p1831_p9)
}
  0x65   : > { %s1835_s0 = scalar_lea.vmem %s2135_s2, 256  ;;  %s1947_s29 = smov [#allocation5]  }
  0x66   : > { %p1836_p1 = scmp.ne.s32.totalorder %s2135_s2, %s1835_s0  ;;  %s1840_s27 = sshll.u32 %s1947_s29, 4  ;;  %s1841_s27 = int_to_ptr.vmem [resolvable:$false] %s1840_s27 }
  0x67   : > { %s1842_s26 = scalar_lea.vmem %s1841_s27, 512  ;;  %p1843_p4 = scmp.lt.s32.totalorder %s2135_s2, %s1841_s27 }
  0x68   : > { %p1838_p2 = pnand %p1836_p1, %p1792_p3  ;;  %p1844_p8 = scmp.lt.s32.totalorder %s1842_s26, %s1835_s0 }
  0x6a   : > { %p1839_p7 = pneg %p1838_p2  ;;  %p1845_p12 = por %p1844_p8, %p1843_p4 }
  0x6c   : > { %p1846_p13 = pnand %p1845_p12, %p1839_p7 }
  0x6e   : > { %1849 = shalt.err (!%p1846_p13)
}
  0x6f   : > { %1700 = dma.hbm_to_vmem [thread:$0]  (!%p2082_p11), %s2133_s12, 256, %s2135_s2, %s2139_s6, %s2464_s7, %s2464_s7, %s1945_s13  }
  0x70   : > { %p2467_p3 = scmp.ne.s32.totalorder %s2455_s25, 0 }
  0x71   : > { %s2170_s17 = sand.u32 (!%p2467_p3), 1, %s1925_s16   ;;  %p2468_p6 = scmp.ne.s32.totalorder (!%p2467_p3), %s2453_s23, 0 }
  0x72   : > { %258 = sbr.rel (%p2467_p3) target bundleno = 430 (0x1ae), region = 36  ;;  %s1336_s8 = sshll.u32 (!%p2467_p3), %s2170_s17, 7 }
  0x73   : > { %s261_s11 = scalar_lea.sflag (!%p2467_p3), [#allocation3], %s2170_s17  ;;  %s2174_s5 = scalar_lea.vmem (!%p2467_p3), [#allocation2], %s1336_s8 }
  0x79   : > { %1904 = dma.done.wait (%p2468_p6), %s261_s11, 2048  }
  0x7a   : > { %1906 = vsyncadd (%p2468_p6), %s261_s11, 4294965248  ;;  %s269_s2 = sand.u32 1, %s2007_s21   ;;  %s1337_s25 = sshll.u32 %s2170_s17, 4 }
  0x7b   : > { %s270_s13 = scalar_lea.sflag [#allocation6], %s269_s2  ;;  %s273_s6 = scalar_lea.vmem [#allocation5], %s1337_s25 }
  0x7c   : > { %1908 = dma.done.wait (%p2468_p6), %s270_s13, 256  }
  0x7d   : > { %1910 = vsyncadd (%p2468_p6), %s270_s13, 4294967040  ;;  %p2469_p11 = scmp.eq.s32.totalorder %s2007_s21, 0 }
  0x7f   : > { %1912 = dma.done.wait (%p2469_p11), [#allocation6], 1024   ;;  %p2470_p0 = pmov %p2469_p11 }
  0x80   : > { %v395_v0 = vld [vmem:[#allocation7 + $0x10] sm:$0xff]  ;;  %v396_v1 = vld [vmem:[#allocation7 + $0x18] sm:$0xff]  ;;  %v2191_v5 = vld [vmem:[%s2174_s5] sm:$0xff]  ;;  %vm350_vm0 = vcmask 1046528   ;;  %vm397_vm1 = vcmask 130048   ;;  %s1339_s10 = sshll.u32 %s2170_s17, 6 }
  0x81   : > { %1914 = vsyncadd (%p2470_p0), [#allocation6], 4294966272  ;;  %v756_v2 = vld [vmem:[#allocation7 + $0x30] sm:$0xff]  ;;  %v1607_v3 = vpack.c.bf16 %v396_v1, %v395_v0  ;;  %v757_v4 = vld [vmem:[#allocation7 + $0x38] sm:$0xff]  ;;  %v351_v8 = vrot.slane %v2191_v5, 1  ;;  %s2371_s7 = scalar_lea.vmem [#allocation8], %s1339_s10 }
  0x82   : > { %v2194_v6 = vld [vmem:[%s2174_s5 + $0x8] sm:$0xff]  ;;  %v2196_v7 = vpack.c.bf16 %v757_v4, %v756_v2  ;;  %v332_v10 = vld [vmem:[%s273_s6] sm:$0xff]  ;;  %v2209_v22 = vld [vmem:[%s2174_s5 + $0x18] sm:$0xff]  ;;  %s1203_s12 = sshll.u32 %s2371_s7, 4  ;;  %s1410_s9 = sshll.u32 %s1933_s18, 10  ;;  %s2380_s12 = int_to_ptr.vmem [resolvable:$true] %s1203_s12 }
  0x83   : > { %v352_v9 = vrot.slane %v2194_v6, 1  ;;  %v333_v11 = vld [vmem:[%s273_s6 + $0x8] sm:$0xff]  ;;  %v2201_v12 = vld [vmem:[%s2174_s5 + $0x10] sm:$0xff]  ;;  %1608 = vmatprep.subr.bf16.mxu1 %v1607_v3  ;;  %v2203_v13 = vrot.slane %v332_v10, 1  ;;  %v753_v16 = vld [vmem:[#allocation7 + $0x20] sm:$0xff]  ;;  %v356_v27 = vrot.slane %v2209_v22, 1  ;;  %s2387_s14 = scalar_lea.hbm %s2441_s4, %s1410_s9 }
  0x84   : > { %v388_v14 = vrot.slane %v333_v11, 1  ;;  %v354_v15 = vrot.slane %v2201_v12, 1  ;;  %v754_v17 = vld [vmem:[#allocation7 + $0x28] sm:$0xff]  ;;  %v392_v18 = vld [vmem:[#allocation7] sm:$0xff]  ;;  %1616 = vmatprep.subr.bf16.mxu0 %v2196_v7  ;;  %1610 = vmatpush3.bf16.msra.mxu1 %v1607_v3  ;;  %v2226_v29 = vld [vmem:[%s2174_s5 + $0x30] sm:$0xff]  ;;  %s1188_s0 = scalar_lea.sflag [#allocation4], %s2170_s17 }
  0x85   : > { %v353_v19 = vsel %vm350_vm0, %v351_v8, %v352_v9  ;;  %v1619_v20 = vpack.c.bf16 %v754_v17, %v753_v16  ;;  %v393_v21 = vld [vmem:[#allocation7 + $0x8] sm:$0xff]  ;;  %v2212_v23 = vld [vmem:[%s2174_s5 + $0x20] sm:$0xff]  ;;  %1618 = vmatpush3.bf16.msra.mxu0 %v2196_v7  ;;  %v2232_v33 = vld [vmem:[%s2174_s5 + $0x38] sm:$0xff]  ;;  %v362_v36 = vrot.slane %v2226_v29, 1  ;;  %s1851_s18 = scalar_lea.vmem %s2380_s12, 1024  ;;  %s1948_s29 = smov [#allocation8]  }
  0x86   : > { %1491 = vmatprep.mubr.msk.f32.mxu1 %vm397_vm1, %v353_v19  ;;  %v389_v24 = vsel %vm350_vm0, %v2203_v13, %v388_v14  ;;  %v355_v25 = vsel %vm350_vm0, %v352_v9, %v354_v15  ;;  %v391_v26 = vsel %vm350_vm0, %v388_v14, %v2203_v13  ;;  %v2223_v28 = vld [vmem:[%s2174_s5 + $0x28] sm:$0xff]  ;;  %v1611_v30 = vpack.c.bf16 %v393_v21, %v392_v18  ;;  %v2243_v39 = vld [vmem:[%s2174_s5 + $0x40] sm:$0xff]  ;;  %v2257_v45 = vld [vmem:[%s2174_s5 + $0x50] sm:$0xff]  ;;  %p1852_p5 = scmp.ne.s32.totalorder %s2380_s12, %s1851_s18  ;;  %s1855_s27 = sshll.u32 %s1948_s29, 4  ;;  %s1856_s27 = int_to_ptr.vmem [resolvable:$false] %s1855_s27 }
  0x87   : > { %1547 = vmatprep.mubr.msk.f32.mxu0 %vm397_vm1, %v389_v24  ;;  %1620 = vmatprep.subr.bf16.mxu0 %v1619_v20  ;;  %v358_v31 = vrot.slane %v2212_v23, 1  ;;  %v360_v32 = vrot.slane %v2223_v28, 1  ;;  %v357_v34 = vsel %vm350_vm0, %v354_v15, %v356_v27  ;;  %v364_v38 = vrot.slane %v2232_v33, 1  ;;  %v2247_v40 = vld [vmem:[%s2174_s5 + $0x48] sm:$0xff]  ;;  %v2260_v46 = vld [vmem:[%s2174_s5 + $0x58] sm:$0xff]  ;;  %v2272_v51 = vld [vmem:[%s2174_s5 + $0x60] sm:$0xff]  ;;  %p1858_p2 = scmp.lt.s32.totalorder %s2380_s12, %s1856_s27 }
  0x88   : > { %1492 = vmatmul.mubr.msk.f32.vlgmr.msra.gmra.mrb[0].mxu1 %vm397_vm1, %v355_v25  ;;  %1548 = vmatmul.mubr.msk.f32.vlgmr.msra.gmra.mrb[0].mxu0 %vm397_vm1, %v391_v26  ;;  %v366_v42 = vrot.slane %v2243_v39, 1  ;;  %v368_v44 = vrot.slane %v2247_v40, 1  ;;  %v370_v48 = vrot.slane %v2257_v45, 1  ;;  %v372_v50 = vrot.slane %v2260_v46, 1  ;;  %v2275_v52 = vld [vmem:[%s2174_s5 + $0x68] sm:$0xff]  ;;  %v330_v57 = vld [vmem:[%s2174_s5 + $0x70] sm:$0xff]  ;;  %p1853_p9 = pnand %p1852_p5, %p2067_p10 }
  0x89   : > { %1612 = vmatprep.subr.bf16.mxu1 %v1611_v30  ;;  %v359_v35 = vsel %vm350_vm0, %v356_v27, %v358_v31  ;;  %1622 = vmatpush3.bf16.msra.mxu0 %v1619_v20  ;;  %v361_v37 = vsel %vm350_vm0, %v358_v31, %v360_v32  ;;  %v363_v41 = vsel %vm350_vm0, %v360_v32, %v362_v36  ;;  %v374_v54 = vrot.slane %v2272_v51, 1  ;;  %v331_v58 = vld [vmem:[%s2174_s5 + $0x78] sm:$0xff]  ;;  %v1372_v8 = vld [vmem:[%s2440_s3] ss:$0 sm:$0xff]  ;;  %s1857_s26 = scalar_lea.vmem %s1856_s27, 2048 }
  0x8a   : > { %1494 = vmatprep.mubr.msk.f32.mxu1 %vm397_vm1, %v357_v34  ;;  %1614 = vmatpush3.bf16.msra.mxu1 %v1611_v30  ;;  %v365_v43 = vsel %vm350_vm0, %v362_v36, %v364_v38  ;;  %v367_v47 = vsel %vm350_vm0, %v364_v38, %v366_v42  ;;  %v369_v49 = vsel %vm350_vm0, %v366_v42, %v368_v44  ;;  %v376_v56 = vrot.slane %v2275_v52, 1  ;;  %p1854_p1 = pneg %p1853_p9  ;;  %p1859_p7 = scmp.lt.s32.totalorder %s1857_s26, %s1851_s18 }
  0x8b   : > { %1554 = vmatprep.mubr.msk.f32.mxu0 %vm397_vm1, %v332_v10  ;;  %1624 = vmatprep.subr.bf16.mxu0 %v2196_v7  ;;  %v371_v53 = vsel %vm350_vm0, %v368_v44, %v370_v48  ;;  %v373_v55 = vsel %vm350_vm0, %v370_v48, %v372_v50  ;;  %v375_v59 = vsel %vm350_vm0, %v372_v50, %v374_v54  ;;  %v378_v60 = vrot.slane %v330_v57, 1 }
  0x8c   : > { %1495 = vmatmul.mubr.msk.f32.gmra.mrb[2].mxu1 %vm397_vm1, %v359_v35  ;;  %v377_v61 = vsel %vm350_vm0, %v374_v54, %v376_v56  ;;  %v380_v62 = vrot.slane %v331_v58, 1  ;;  %p1860_p4 = por %p1859_p7, %p1858_p2 }
  0x8d   : > { %1497 = vmatprep.mubr.msk.f32.mxu1 %vm397_vm1, %v361_v37  ;;  %v379_v63 = vsel %vm350_vm0, %v376_v56, %v378_v60 }
  0x8e   : > { %v381_v0 = vsel %vm350_vm0, %v378_v60, %v380_v62  ;;  %v386_v1 = vsel %vm350_vm0, %v380_v62, %v2203_v13  ;;  %p1861_p8 = pnand %p1860_p4, %p1854_p1 }
  0x90   : > { %1498 = vmatmul.mubr.msk.f32.gmra.mrb[4].mxu1 %vm397_vm1, %v363_v41  ;;  %1555 = vmatmul.mubr.msk.f32.vlgmr.msra.gmra.mrb[0].mxu0 %vm397_vm1, %v333_v11 }
  0x91   : > { %1500 = vmatprep.mubr.msk.f32.mxu1 %vm397_vm1, %v365_v43  ;;  %1626 = vmatpush3.bf16.msra.mxu0 %v2196_v7 }
  0x92   : > { %1561 = vmatprep.mubr.msk.f32.mxu0 %vm397_vm1, %v357_v34  ;;  %1628 = vmatprep.subr.bf16.mxu0 %v1619_v20 }
  0x94   : > { %1501 = vmatmul.mubr.msk.f32.gmra.mrb[6].mxu1 %vm397_vm1, %v367_v47  ;;  %1562 = vmatmul.mubr.msk.f32.vlgmr.msra.gmra.mrb[2].mxu0 %vm397_vm1, %v359_v35 }
  0x95   : > { %1503 = vmatprep.mubr.msk.f32.mxu1 %vm397_vm1, %v369_v49  ;;  %1630 = vmatpush3.bf16.msra.mxu0 %v1619_v20 }
  0x96   : > { %1564 = vmatprep.mubr.msk.f32.mxu0 %vm397_vm1, %v361_v37 }
  0x98   : > { %1504 = vmatmul.mubr.msk.f32.gmra.mrb[8].mxu1 %vm397_vm1, %v371_v53  ;;  %1565 = vmatmul.mubr.msk.f32.gmra.mrb[4].mxu0 %vm397_vm1, %v363_v41 }
  0x99   : > { %1506 = vmatprep.mubr.msk.f32.mxu1 %vm397_vm1, %v373_v55  ;;  %1567 = vmatprep.mubr.msk.f32.mxu0 %vm397_vm1, %v365_v43 }
  0x9c   : > { %1507 = vmatmul.mubr.msk.f32.gmra.mrb[10].mxu1 %vm397_vm1, %v375_v59  ;;  %1568 = vmatmul.mubr.msk.f32.gmra.mrb[6].mxu0 %vm397_vm1, %v367_v47 }
  0x9d   : > { %1509 = vmatprep.mubr.msk.f32.mxu1 %vm397_vm1, %v377_v61  ;;  %1570 = vmatprep.mubr.msk.f32.mxu0 %vm397_vm1, %v369_v49 }
  0xa0   : > { %1510 = vmatmul.mubr.msk.f32.gmra.mrb[12].mxu1 %vm397_vm1, %v379_v63  ;;  %1571 = vmatmul.mubr.msk.f32.gmra.mrb[8].mxu0 %vm397_vm1, %v371_v53 }
  0xa1   : > { %1512 = vmatprep.mubr.msk.f32.mxu1 %vm397_vm1, %v381_v0  ;;  %1573 = vmatprep.mubr.msk.f32.mxu0 %vm397_vm1, %v373_v55 }
  0xa4   : > { %1513 = vmatmul.mubr.msk.f32.gmra.mrb[14].mxu1 %vm397_vm1, %v386_v1  ;;  %1574 = vmatmul.mubr.msk.f32.gmra.mrb[10].mxu0 %vm397_vm1, %v375_v59 }
  0xa5   : > { %1519 = vmatprep.mubr.msk.f32.mxu1 %vm397_vm1, %v2191_v5  ;;  %1576 = vmatprep.mubr.msk.f32.mxu0 %vm397_vm1, %v377_v61 }
  0xa8   : > { %1520 = vmatmul.mubr.msk.f32.vlgmr.msra.gmra.mrb[0].mxu1 %vm397_vm1, %v2194_v6  ;;  %1577 = vmatmul.mubr.msk.f32.gmra.mrb[12].mxu0 %vm397_vm1, %v379_v63 }
  0xa9   : > { %1522 = vmatprep.mubr.msk.f32.mxu1 %vm397_vm1, %v2201_v12  ;;  %1579 = vmatprep.mubr.msk.f32.mxu0 %vm397_vm1, %v381_v0 }
  0xac   : > { %1523 = vmatmul.mubr.msk.f32.gmra.mrb[2].mxu1 %vm397_vm1, %v2209_v22  ;;  %1580 = vmatmul.mubr.msk.f32.gmra.mrb[14].mxu0 %vm397_vm1, %v386_v1 }
  0xad   : > { %1525 = vmatprep.mubr.msk.f32.mxu1 %vm397_vm1, %v2212_v23  ;;  %1586 = vmatprep.mubr.msk.f32.mxu0 %vm397_vm1, %v2201_v12 }
  0xb0   : > { %1526 = vmatmul.mubr.msk.f32.gmra.mrb[4].mxu1 %vm397_vm1, %v2223_v28  ;;  %1587 = vmatmul.mubr.msk.f32.vlgmr.msra.gmra.mrb[2].mxu0 %vm397_vm1, %v2209_v22 }
  0xb1   : > { %1528 = vmatprep.mubr.msk.f32.mxu1 %vm397_vm1, %v2226_v29  ;;  %1589 = vmatprep.mubr.msk.f32.mxu0 %vm397_vm1, %v2212_v23 }
  0xb4   : > { %1529 = vmatmul.mubr.msk.f32.gmra.mrb[6].mxu1 %vm397_vm1, %v2232_v33  ;;  %1590 = vmatmul.mubr.msk.f32.gmra.mrb[4].mxu0 %vm397_vm1, %v2223_v28 }
  0xb5   : > { %1531 = vmatprep.mubr.msk.f32.mxu1 %vm397_vm1, %v2243_v39  ;;  %1592 = vmatprep.mubr.msk.f32.mxu0 %vm397_vm1, %v2226_v29 }
  0xb8   : > { %1532 = vmatmul.mubr.msk.f32.gmra.mrb[8].mxu1 %vm397_vm1, %v2247_v40  ;;  %1593 = vmatmul.mubr.msk.f32.gmra.mrb[6].mxu0 %vm397_vm1, %v2232_v33 }
  0xb9   : > { %1534 = vmatprep.mubr.msk.f32.mxu1 %vm397_vm1, %v2257_v45  ;;  %1595 = vmatprep.mubr.msk.f32.mxu0 %vm397_vm1, %v2243_v39 }
  0xbc   : > { %1535 = vmatmul.mubr.msk.f32.gmra.mrb[10].mxu1 %vm397_vm1, %v2260_v46  ;;  %1596 = vmatmul.mubr.msk.f32.gmra.mrb[8].mxu0 %vm397_vm1, %v2247_v40 }
  0xbd   : > { %1537 = vmatprep.mubr.msk.f32.mxu1 %vm397_vm1, %v2272_v51  ;;  %1598 = vmatprep.mubr.msk.f32.mxu0 %vm397_vm1, %v2257_v45 }
  0xc0   : > { %1538 = vmatmul.mubr.msk.f32.gmra.mrb[12].mxu1 %vm397_vm1, %v2275_v52  ;;  %1599 = vmatmul.mubr.msk.f32.gmra.mrb[10].mxu0 %vm397_vm1, %v2260_v46 }
  0xc1   : > { %1540 = vmatprep.mubr.msk.f32.mxu1 %vm397_vm1, %v330_v57  ;;  %1601 = vmatprep.mubr.msk.f32.mxu0 %vm397_vm1, %v2272_v51 }
  0xc4   : > { %1541 = vmatmul.mubr.msk.f32.gmra.mrb[14].mxu1 %vm397_vm1, %v331_v58  ;;  %1602 = vmatmul.mubr.msk.f32.gmra.mrb[12].mxu0 %vm397_vm1, %v2275_v52 }
  0xc5   : > { %1604 = vmatprep.mubr.msk.f32.mxu0 %vm397_vm1, %v330_v57 }
  0xc8   : > { %1605 = vmatmul.mubr.msk.f32.gmra.mrb[14].mxu0 %vm397_vm1, %v331_v58 }
 0x163   : > { %v1556_v2 = vpop.f32.mrb[0].mxu0 }
 0x164   : > { %v907_v3 = vpop.f32.mrb[1].mxu0 }
 0x17b   : > { %v1521_v4 = vpop.f32.mrb[0].mxu1 }
 0x17c   : > { %v666_v5 = vpop.f32.mrb[1].mxu1 }
 0x17d   : > { %v1631_v10 = vadd.f32 %v1372_v8, %v666_v5 }
 0x17f   : > { %v1524_v6 = vpop.f32.mrb[2].mxu1 }
 0x180   : > { %v675_v7 = vpop.f32.mrb[3].mxu1 }
 0x181   : > { %v1633_v16 = vadd.f32 %v1372_v8, %v675_v7 }
 0x183   : > { %v1527_v9 = vpop.f32.mrb[4].mxu1  ;;  %v1588_v11 = vpop.f32.mrb[2].mxu0 }
 0x184   : > { %v684_v12 = vpop.f32.mrb[5].mxu1  ;;  %v1109_v13 = vpop.f32.mrb[3].mxu0 }
 0x185   : > { %v1632_v14 = vadd.f32 %v1631_v10, %v1109_v13  ;;  %v1635_v22 = vadd.f32 %v1372_v8, %v684_v12 }
 0x187   : > { %v1530_v15 = vpop.f32.mrb[6].mxu1  ;;  %1179 = vst [vmem:[%s2371_s7] sm:$0xff] %v1632_v14  ;;  %v1591_v17 = vpop.f32.mrb[4].mxu0 }
 0x188   : > { %v693_v18 = vpop.f32.mrb[7].mxu1  ;;  %v1118_v19 = vpop.f32.mrb[5].mxu0 }
 0x189   : > { %v1634_v20 = vadd.f32 %v1633_v16, %v1118_v19  ;;  %v1637_v28 = vadd.f32 %v1372_v8, %v693_v18 }
 0x18b   : > { %v1533_v21 = vpop.f32.mrb[8].mxu1  ;;  %1180 = vst [vmem:[%s2371_s7 + $0x8] sm:$0xff] %v1634_v20  ;;  %v1594_v23 = vpop.f32.mrb[6].mxu0 }
 0x18c   : > { %v702_v24 = vpop.f32.mrb[9].mxu1  ;;  %v1127_v25 = vpop.f32.mrb[7].mxu0 }
 0x18d   : > { %v1636_v26 = vadd.f32 %v1635_v22, %v1127_v25  ;;  %v1639_v34 = vadd.f32 %v1372_v8, %v702_v24 }
 0x18f   : > { %v1536_v27 = vpop.f32.mrb[10].mxu1  ;;  %1181 = vst [vmem:[%s2371_s7 + $0x10] sm:$0xff] %v1636_v26  ;;  %v1597_v29 = vpop.f32.mrb[8].mxu0 }
 0x190   : > { %v711_v30 = vpop.f32.mrb[11].mxu1  ;;  %v1136_v31 = vpop.f32.mrb[9].mxu0 }
 0x191   : > { %v1638_v32 = vadd.f32 %v1637_v28, %v1136_v31  ;;  %v1641_v40 = vadd.f32 %v1372_v8, %v711_v30 }
 0x193   : > { %v1539_v33 = vpop.f32.mrb[12].mxu1  ;;  %1182 = vst [vmem:[%s2371_s7 + $0x18] sm:$0xff] %v1638_v32  ;;  %v1600_v35 = vpop.f32.mrb[10].mxu0 }
 0x194   : > { %v720_v36 = vpop.f32.mrb[13].mxu1  ;;  %v1145_v37 = vpop.f32.mrb[11].mxu0 }
 0x195   : > { %v1640_v38 = vadd.f32 %v1639_v34, %v1145_v37  ;;  %v1643_v47 = vadd.f32 %v1372_v8, %v720_v36 }
 0x197   : > { %v1542_v39 = vpop.f32.mrb[14].mxu1  ;;  %1183 = vst [vmem:[%s2371_s7 + $0x20] sm:$0xff] %v1640_v38  ;;  %v1603_v41 = vpop.f32.mrb[12].mxu0 }
 0x198   : > { %v729_v42 = vpop.f32.mrb[15].mxu1  ;;  %v1154_v44 = vpop.f32.mrb[13].mxu0 }
 0x199   : > { %v1645_v43 = vadd.f32 %v1372_v8, %v729_v42  ;;  %v1642_v45 = vadd.f32 %v1641_v40, %v1154_v44 }
 0x19b   : > { %v1646_v46 = vadd.f32 %v1645_v43, %v907_v3  ;;  %1184 = vst [vmem:[%s2371_s7 + $0x28] sm:$0xff] %v1642_v45  ;;  %v1606_v48 = vpop.f32.mrb[14].mxu0 }
 0x19c   : > { %v1163_v49 = vpop.f32.mrb[15].mxu0 }
 0x19d   : > { %1186 = vst [vmem:[%s2371_s7 + $0x38] sm:$0xff] %v1646_v46  ;;  %v1644_v50 = vadd.f32 %v1643_v47, %v1163_v49 }
 0x19f   : > { %1185 = vst [vmem:[%s2371_s7 + $0x30] sm:$0xff] %v1644_v50 }
 0x1a0   : > { %1864 = shalt.err (!%p1861_p8)
}
 0x1a1   : > { %s1865_s8 = scalar_lea.hbm %s2387_s14, 1024  ;;  %s1869_s2 = scalar_lea.hbm %s2441_s4, 2048 }
 0x1a2   : > { %p1866_p12 = scmp.ne.s32.totalorder %s2387_s14, %s1865_s8  ;;  %p1870_p6 = scmp.lt.u32.totalorder %s2387_s14, %s2441_s4 }
 0x1a3   : > { %p1871_p11 = scmp.lt.u32.totalorder %s1869_s2, %s1865_s8  ;;  %p1873_p5 = scmp.lt.u32.totalorder %s1865_s8, %s2387_s14 }
 0x1a4   : > { %p1867_p13 = pnand %p1866_p12, %p2067_p10 }
 0x1a5   : > { %p1872_p0 = por %p1871_p11, %p1870_p6 }
 0x1a6   : > { %p1868_p3 = pneg %p1867_p13 }
 0x1a7   : > { %p1874_p9 = por %p1873_p5, %p1872_p0 }
 0x1a9   : > { %p1875_p1 = pnand %p1874_p9, %p1868_p3 }
 0x1ab   : > { %1878 = shalt.err (!%p1875_p1)
}
 0x1ac   : > { %s1949_s6 = smov 128   ;;  %s1950_s21 = smov 8  }
 0x1ad   : > { %1688 = dma.vmem_to_hbm [thread:$0]  (%p2067_p10), %s2380_s12, 1024, %s2387_s14, %s1188_s0, %s1949_s6, %s1949_s6, %s1950_s21  }
 0x1ae PF: > { %s1218_s23 = sand.u32 1, %s1921_s15   ;;  %p2471_p2 = scmp.ne.s32.totalorder %s2454_s24, 0 }
 0x1af   : > { %p2472_p7 = scmp.ge.s32.totalorder %s1941_s20, 2  ;;  %s1219_s10 = scalar_lea.sflag [#allocation4], %s1218_s23 }
 0x1b1   : > { %p1702_p4 = pnand %p2472_p7, %p2471_p2 }
 0x1b3   : > { %1916 = dma.done.wait (!%p1702_p4), %s1219_s10, 1024  }
 0x1b4   : > { %1918 = vsyncadd (!%p1702_p4), %s1219_s10, 4294966272  ;;  %s23_s20 = sadd.s32 1, %s1941_s20   ;;  %s2473_s7 = sld [smem:[#allocation13_spill]] }
 0x1b5   : > { %p20_p8 = scmp.ge.s32.totalorder %s23_s20, 4   ;;  %s2474_s17 = sld [smem:[#allocation15_spill]] }
 0x1b6   : > { %s2475_s28 = sld [smem:[#allocation14_spill]]  ;;  %s2476_s15 = smov %s1925_s16 }
 0x1b7   : > { %s2478_s18 = smov %s1937_s19  ;;  %22 = sbr.rel (!%p20_p8) target bundleno = 11 (0xb), region = 101 }
 0x1ba   : > { %s2477_s16 = smov %s2473_s7 }
 0x1bc   : > { %s2479_s19 = smov %s2475_s28 }
 0x1be   :  { %1224 = vsyncpa [#allocation3], 1 }
 0x1bf   :  { %1226 = vsyncpa [#allocation3 + $0x1], 1 }
 0x1c0   :  { %1227 = vsyncpa [#allocation6], 1 }
 0x1c1   :  { %1229 = vsyncpa [#allocation6 + $0x1], 1 }
 0x1c2   :  { %1230 = vsyncpa [#allocation4], 1 }
 0x1c3   :  { %1232 = vsyncpa [#allocation4 + $0x1], 1 }

</bundles_post_ra>
